<compile_context>
chip_gen: v7x
topology: tpu7x:2x2x1
jax: 0.10.0
libtpu: 0.0.40
codegen_flags: <defaults>
</compile_context>

<pallas_src>
import functools

import jax
import jax.numpy as jnp
import numpy as np
from jax import lax
from jax.experimental import pallas as pl
from jax.experimental.pallas import tpu as pltpu


# ---------------------------------------------------------------------------
# pltpu.roll direction probe (review: "verify the sign convention matches").
# ---------------------------------------------------------------------------
_ROLL_SIGN = None


def _roll_sign():
    """+1 if pltpu.roll matches np.roll (out[p] = in[(p - shift) % n]),
    -1 if it rotates the other way, 0 if roll is unusable (then fall back to
    a slice+concat rotate).  Probed once with a tiny kernel and cached."""
    global _ROLL_SIGN
    if _ROLL_SIGN is None:
        try:
            def probe(x_ref, o_ref):
                o_ref[...] = pltpu.roll(x_ref[...], shift=1, axis=1)

            with jax.ensure_compile_time_eval():
                x = jnp.broadcast_to(jnp.arange(128, dtype=jnp.int32), (8, 128))
                out = pl.pallas_call(
                    probe, out_shape=jax.ShapeDtypeStruct((8, 128), jnp.int32)
                )(x)
                first = int(jax.device_get(out)[0, 0])
            _ROLL_SIGN = 1 if first == 127 else -1
        except Exception:   # safety net: roll unavailable -> concat fallback
            _ROLL_SIGN = 0
    return _ROLL_SIGN


# ---------------------------------------------------------------------------
# Kernel
# ---------------------------------------------------------------------------
def _resnet1d_kernel(pos_ref, x_ref, w1d_ref, w2_ref, o_ref, *,
                     L, K, C_in, C_out, acc_taps1, acc_taps2, final_act,
                     roll_sign):
    """One batch tile (TB elements flattened onto the lane axis) per grid step.

    pos_ref : (1, TB*L)          position-within-sequence (resident, int32)
    x_ref   : (C_in, TB*L)       input slab (already in the MXU feed dtype)
    w1d_ref : (2*C_out, K*C_in)  conv1 taps with the 1x1 downsample fused into
                                 rows [C_out:2*C_out] of the centre tap
    w2_ref  : (C_out, K*C_out)   conv2 taps
    o_ref   : (C_out, TB*L)      output slab
    """
    pad = (K - 1) // 2
    lanes = x_ref.shape[-1]

    # Boundary masks: computed ONCE per grid step, shared by both convs
    # (no per-tap iota / modulo at full slab width on the VPU).
    pos = pos_ref[...]                                       # (1, lanes) i32
    masks = {s: ((pos >= -s) if s < 0 else (pos < L - s))
             for s in range(-pad, pad + 1) if s != 0}

    def tap(a, s):
        # t[:, p] = a[:, p + s] inside each length-L window, zero outside
        # (the masking also implements the conv "SAME" zero padding).
        if s == 0:
            return a
        if roll_sign != 0 and lanes % 128 == 0:
            # Single XLU lane-rotate in an otherwise idle slot.
            rolled = pltpu.roll(a, shift=((-s) * roll_sign) % lanes, axis=1)
        else:
            r = s % lanes
            rolled = jnp.concatenate([a[:, r:], a[:, :r]], axis=1)
        return jnp.where(masks[s], rolled, jnp.zeros_like(rolled))

    def conv(a, w, c, accumulate):
        # "SAME" K-tap conv of `a` (c, lanes) against fused weight `w`
        # (rows, K*c): either one MXU matmul over an im2col stack (small c)
        # or K accumulated matmuls (c already fills the MXU contraction dim,
        # which avoids the (K*c, lanes) im2col VMEM temporary).
        if accumulate:
            acc = None
            for k in range(K):
                part = jnp.dot(w[:, k * c:(k + 1) * c], tap(a, k - pad),
                               preferred_element_type=jnp.float32)
                acc = part if acc is None else acc + part
            return acc
        cols = jnp.concatenate([tap(a, k - pad) for k in range(K)], axis=0)
        return jnp.dot(w, cols, preferred_element_type=jnp.float32)

    x = x_ref[...]                                           # (C_in, lanes)
    w1d = w1d_ref[...]
    w2 = w2_ref[...]

    # conv1 with the 1x1 downsample fused in (one MXU pass over x).
    if acc_taps1:
        h = conv(x, w1d[:C_out, :], C_in, True)
        xd = jnp.dot(w1d[C_out:, pad * C_in:(pad + 1) * C_in], x,
                     preferred_element_type=jnp.float32)
    else:
        hx = conv(x, w1d, C_in, False)                       # (2*C_out, lanes)
        h, xd = hx[:C_out, :], hx[C_out:, :]

    # intermediate ReLU in f32, single cast back to the MXU feed dtype.
    h = jnp.maximum(h, 0.0).astype(x.dtype)

    # conv2, residual add, optional final ReLU.
    y = conv(h, w2, C_out, acc_taps2) + xd
    if final_act:
        y = jnp.maximum(y, 0.0)
    o_ref[...] = y.astype(o_ref.dtype)


# ---------------------------------------------------------------------------
# Wrapper
# ---------------------------------------------------------------------------
def _vmem_capacity_bytes():
    try:
        info = pltpu.get_tpu_info()
        for name in ("vmem_capacity_bytes", "vmem_size_bytes", "vmem_bytes"):
            cap = getattr(info, name, None)
            if cap:
                return int(cap)
    except Exception:
        pass
    return 64 * 1024 * 1024          # conservative: v7x per-TensorCore VMEM


def _pick_batch_tile(N, L, per_lane_bytes, vmem_budget):
    """Largest divisor TB of N with TB*L a multiple of 128 lanes and an
    estimated per-step VMEM footprint inside `vmem_budget`.  Prefers >= 2 grid
    steps (v7x has 2 TensorCores; pipelining needs more than one step).
    Falls back to TB=N (block == full array extent, always a legal BlockSpec).
    """
    aligned = [tb for tb in range(1, N + 1)
               if N % tb == 0 and (tb * L) % 128 == 0]
    if not aligned:
        return N
    fit = [tb for tb in aligned if tb * L * per_lane_bytes <= vmem_budget]
    cand = fit if fit else aligned[:1]
    multi = [tb for tb in cand if N // tb >= 2]
    return max(multi) if multi else max(cand)


def resnet1d_forward(x, w1, w2, wd=None, *, kernel_size=3, activation=True,
                     batch_tile=None, mxu_dtype=jnp.bfloat16,
                     out_dtype=jnp.float32):
    """ResNet1D forward.  x: (N, C_in, L) -> (N, C_out, L).

    mxu_dtype feeds the MXU (bf16 by default: ~2x+ throughput on v6e/v7x;
    pass None for a pure-f32 feed).  Accumulation is always f32.
    wd is the (C_out, C_in, 1) 1x1 downsample weight; None means identity
    residual (the module only builds a downsample when channels differ).
    """
    N, C_in, L = x.shape
    C_out, _, K = w1.shape
    assert K == kernel_size and K % 2 == 1, "odd kernel_size / SAME pad only"
    assert w2.shape == (C_out, C_out, K)
    # TODO(synk): stride != 1, b_norm=True and depth != 2 are not implemented
    # (module defaults: stride=1, b_norm=False, depth=2).

    if wd is None:
        assert C_in == C_out, "identity residual requires C_in == C_out"
        wd = jnp.eye(C_out, dtype=x.dtype)[:, :, None]

    compute_dtype = jnp.float32 if mxu_dtype is None else mxu_dtype
    bpe = jnp.dtype(compute_dtype).itemsize
    pad = (K - 1) // 2

    # VMEM-aware tile selection (v5e/v6e: 128 MiB VMEM, v7x: 64 MiB).
    vmem_cap = _vmem_capacity_bytes()
    vmem_limit = (min(vmem_cap, 128 * 1024 * 1024) * 3) // 4
    per_lane = (2 * bpe * C_in            # double-buffered input block
                + 2 * 4 * C_out           # double-buffered f32 output block
                + bpe * K * C_in          # conv1 tap / im2col temporaries
                + 4 * 2 * C_out           # conv1 + downsample f32 result
                + bpe * C_out             # relu(h) cast
                + bpe * K * C_out         # conv2 tap / im2col temporaries
                + 4 * C_out               # conv2 f32 result
                + 16)                     # pos + slack
    TB = batch_tile if batch_tile is not None else _pick_batch_tile(
        N, L, per_lane, int(vmem_limit * 0.6))
    assert N % TB == 0, "batch tile must divide N"
    lanes = TB * L

    # Wrapper-side layout plumbing: lane-dense activations, fused-tap weights
    # with the 1x1 downsample stacked into conv1's centre tap, and a SINGLE
    # cast to the MXU feed dtype (no per-grid-step casts in the kernel).
    x_flat = (jnp.transpose(x, (1, 0, 2)).reshape(C_in, N * L)
              .astype(compute_dtype))
    w1t = jnp.transpose(w1, (0, 2, 1)).reshape(C_out, K * C_in)
    wde = jnp.zeros((C_out, K * C_in), w1.dtype)
    wde = wde.at[:, pad * C_in:(pad + 1) * C_in].set(wd.reshape(C_out, C_in))
    w1d = jnp.concatenate([w1t, wde], axis=0).astype(compute_dtype)
    w2f = (jnp.transpose(w2, (0, 2, 1)).reshape(C_out, K * C_out)
           .astype(compute_dtype))
    pos = jnp.tile(jnp.arange(L, dtype=jnp.int32), TB)[None, :]   # (1, lanes)
    # TODO(synk): the (N,C,L)<->(C,N*L) transposes are XLA-side HBM passes; a
    # native-NCW in-kernel relayout is lane-wasteful for small L, so they stay
    # in the wrapper.

    kernel = functools.partial(
        _resnet1d_kernel, L=L, K=K, C_in=C_in, C_out=C_out,
        acc_taps1=(C_in >= 128), acc_taps2=(C_out >= 128),
        final_act=activation, roll_sign=_roll_sign())

    flops = 2 * N * L * C_out * (K * C_in + K * C_out + C_in)
    bytes_accessed = (N * L * C_in * bpe
                      + N * L * C_out * jnp.dtype(out_dtype).itemsize
                      + (2 * C_out * K * C_in + C_out * K * C_out) * bpe
                      + 4 * lanes)

    out_flat = pl.pallas_call(
        kernel,
        out_shape=jax.ShapeDtypeStruct((C_out, N * L), out_dtype),
        grid_spec=pltpu.PrefetchScalarGridSpec(
            num_scalar_prefetch=0,
            grid=(N // TB,),
            in_specs=[
                pl.BlockSpec((1, lanes), lambda n: (0, 0)),             # pos
                pl.BlockSpec((C_in, lanes), lambda n: (0, n)),          # x slab
                pl.BlockSpec((2 * C_out, K * C_in), lambda n: (0, 0)),  # w1+ds
                pl.BlockSpec((C_out, K * C_out), lambda n: (0, 0)),     # w2
            ],
            out_specs=pl.BlockSpec((C_out, lanes), lambda n: (0, n)),
        ),
        compiler_params=pltpu.CompilerParams(
            dimension_semantics=("parallel",),   # batch tiles are independent
            vmem_limit_bytes=int(vmem_limit),
        ),
        cost_estimate=pl.CostEstimate(flops=int(flops), transcendentals=0,
                                      bytes_accessed=int(bytes_accessed)),
    )(pos, x_flat, w1d, w2f)

    return jnp.transpose(out_flat.reshape(C_out, N, L), (1, 0, 2))


# ---------------------------------------------------------------------------
# Pure-JAX reference (mirrors the PyTorch module) + self-test
# ---------------------------------------------------------------------------
def _reference_forward(x, w1, w2, wd=None, activation=True):
    dn = ("NCW", "OIW", "NCW")
    h = lax.conv_general_dilated(x, w1, window_strides=(1,), padding="SAME",
                                 dimension_numbers=dn)
    h = jnp.maximum(h, 0.0)
    h = lax.conv_general_dilated(h, w2, window_strides=(1,), padding="SAME",
                                 dimension_numbers=dn)
    xd = x if wd is None else lax.conv_general_dilated(
        x, wd, window_strides=(1,), padding="VALID", dimension_numbers=dn)
    y = h + xd
    return jnp.maximum(y, 0.0) if activation else y


if __name__ == "__main__":
    key = jax.random.PRNGKey(0)

    def run_case(N, C_in, C_out, L, K=3, identity_residual=False,
                 mxu_dtype=jnp.bfloat16, rtol=1e-1, atol=1e-1, **kwargs):
        ks = jax.random.split(jax.random.fold_in(key, 131 * N + C_in), 4)
        x = jax.random.normal(ks[0], (N, C_in, L), dtype=jnp.float32)
        w1 = jax.random.normal(ks[1], (C_out, C_in, K), dtype=jnp.float32) * 0.2
        w2 = jax.random.normal(ks[2], (C_out, C_out, K), dtype=jnp.float32) * 0.2
        wd = (None if identity_residual else
              jax.random.normal(ks[3], (C_out, C_in, 1), dtype=jnp.float32) * 0.2)
        out = jax.block_until_ready(
            resnet1d_forward(x, w1, w2, wd, kernel_size=K,
                             mxu_dtype=mxu_dtype, **kwargs))
        ref = jax.block_until_ready(_reference_forward(x, w1, w2, wd))
        np.testing.assert_allclose(np.asarray(out), np.asarray(ref),
                                   rtol=rtol, atol=atol)

    # f32 MXU feed, single 128-lane grid step.
    run_case(N=8, C_in=4, C_out=8, L=16, mxu_dtype=None, rtol=2e-2, atol=2e-2)
    # Default bf16 MXU feed (v6e/v7x recommendation), two 128-lane grid steps.
    run_case(N=16, C_in=4, C_out=8, L=16, mxu_dtype=jnp.bfloat16)
    # Identity residual (in_channels == out_channels => module has no downsample).
    run_case(N=16, C_in=8, C_out=8, L=16, identity_residual=True,
             mxu_dtype=None, rtol=2e-2, atol=2e-2)

    print("KERNEL_OK")
</pallas_src>

<mosaic_0001>
module attributes {stable_mosaic.version = 11 : i64} {
  func.func @probe(%arg0: memref<8x128xi32, #tpu.memory_space<vmem>>, %arg1: memref<8x128xi32, #tpu.memory_space<vmem>>) attributes {dimension_semantics = [], scalar_prefetch = 0 : i64, scratch_operands = 0 : i64, tpu.core_type = #tpu.core_type<tc>} {
    %c0 = arith.constant 0 : index
    %c0_0 = arith.constant 0 : index
    %0 = vector.load %arg0[%c0, %c0_0] : memref<8x128xi32, #tpu.memory_space<vmem>>, vector<8x128xi32>
    %c1_i32 = arith.constant 1 : i32
    %1 = tpu.dynamic_rotate %0 by %c1_i32 dim 1 : vector<8x128xi32>, i32 -> vector<8x128xi32>
    %c0_1 = arith.constant 0 : index
    %c0_2 = arith.constant 0 : index
    %2 = vector.load %arg1[%c0_1, %c0_2] : memref<8x128xi32, #tpu.memory_space<vmem>>, vector<8x128xi32>
    tpu.vector_store %arg1[%c0_1, %c0_2], %1 {strides = array<i32>} : memref<8x128xi32, #tpu.memory_space<vmem>>, vector<8x128xi32>,
    return
  }
}

module attributes {stable_mosaic.version = 11 : i64} {
  func.func @_resnet1d_kernel(%arg0: i32, %arg1: memref<1x128xi32, #tpu.memory_space<vmem>>, %arg2: memref<4x128xf32, #tpu.memory_space<vmem>>, %arg3: memref<16x12xf32, #tpu.memory_space<vmem>>, %arg4: memref<8x24xf32, #tpu.memory_space<vmem>>, %arg5: memref<8x128xf32, #tpu.memory_space<vmem>>) attributes {dimension_semantics = [#tpu.dimension_semantics<parallel>], iteration_bounds = array<i64: 1>, scalar_prefetch = 0 : i64, scratch_operands = 0 : i64, tpu.core_type = #tpu.core_type<tc>, window_params = [{pipeline_mode = #tpu.pipeline_mode<synchronous>, transform_indices = @transform_0, window_bounds = array<i64: 1, 128>}, {transform_indices = @transform_1, window_bounds = array<i64: 4, 128>}, {pipeline_mode = #tpu.pipeline_mode<synchronous>, transform_indices = @transform_2, window_bounds = array<i64: 16, 12>}, {pipeline_mode = #tpu.pipeline_mode<synchronous>, transform_indices = @transform_3, window_bounds = array<i64: 8, 24>}, {transform_indices = @transform_4, window_bounds = array<i64: 8, 128>}]} {
    %c0 = arith.constant 0 : index
    %c0_0 = arith.constant 0 : index
    %0 = vector.load %arg1[%c0, %c0_0] : memref<1x128xi32, #tpu.memory_space<vmem>>, vector<1x128xi32>
    %c1_i32 = arith.constant 1 : i32
    %1 = vector.broadcast %c1_i32 : i32 to vector<1x128xi32>
    %2 = arith.cmpi sge, %0, %1 : vector<1x128xi32>
    %c15_i32 = arith.constant 15 : i32
    %3 = vector.broadcast %c15_i32 : i32 to vector<1x128xi32>
    %4 = arith.cmpi slt, %0, %3 : vector<1x128xi32>
    %c0_1 = arith.constant 0 : index
    %c0_2 = arith.constant 0 : index
    %5 = vector.load %arg2[%c0_1, %c0_2] : memref<4x128xf32, #tpu.memory_space<vmem>>, vector<4x128xf32>
    %c0_3 = arith.constant 0 : index
    %c0_4 = arith.constant 0 : index
    %6 = vector.load %arg3[%c0_3, %c0_4] : memref<16x12xf32, #tpu.memory_space<vmem>>, vector<16x12xf32>
    %c0_5 = arith.constant 0 : index
    %c0_6 = arith.constant 0 : index
    %7 = vector.load %arg4[%c0_5, %c0_6] : memref<8x24xf32, #tpu.memory_space<vmem>>, vector<8x24xf32>
    %8 = vector.extract_strided_slice %5 {offsets = [0, 127], sizes = [4, 1], strides = [1, 1]} : vector<4x128xf32> to vector<4x1xf32>
    %9 = vector.extract_strided_slice %5 {offsets = [0, 0], sizes = [4, 127], strides = [1, 1]} : vector<4x128xf32> to vector<4x127xf32>
    %10 = tpu.concatenate %8, %9 in 1 : vector<4x1xf32>, vector<4x127xf32> -> vector<4x128xf32>
    %cst = arith.constant 0.000000e+00 : f32
    %11 = vector.broadcast %cst : f32 to vector<4x128xf32>
    %12 = vector.shape_cast %2 : vector<1x128xi1> to vector<1x128xi1>
    %13 = vector.broadcast %12 : vector<1x128xi1> to vector<4x128xi1>
    %14 = arith.select %13, %10, %11 : vector<4x128xi1>, vector<4x128xf32>
    %15 = vector.extract_strided_slice %5 {offsets = [0, 1], sizes = [4, 127], strides = [1, 1]} : vector<4x128xf32> to vector<4x127xf32>
    %16 = vector.extract_strided_slice %5 {offsets = [0, 0], sizes = [4, 1], strides = [1, 1]} : vector<4x128xf32> to vector<4x1xf32>
    %17 = tpu.concatenate %15, %16 in 1 : vector<4x127xf32>, vector<4x1xf32> -> vector<4x128xf32>
    %cst_7 = arith.constant 0.000000e+00 : f32
    %18 = vector.broadcast %cst_7 : f32 to vector<4x128xf32>
    %19 = vector.shape_cast %4 : vector<1x128xi1> to vector<1x128xi1>
    %20 = vector.broadcast %19 : vector<1x128xi1> to vector<4x128xi1>
    %21 = arith.select %20, %17, %18 : vector<4x128xi1>, vector<4x128xf32>
    %22 = tpu.concatenate %14, %5, %21 in 0 : vector<4x128xf32>, vector<4x128xf32>, vector<4x128xf32> -> vector<12x128xf32>
    %cst_8 = arith.constant dense<0.000000e+00> : vector<16x128xf32>
    %23 = tpu.matmul %6, %22, %cst_8 {dimension_numbers = #tpu.dot_dimension_numbers<[1], [0], [0], [1], [0, 0, 1, 1], [], []>} : vector<16x12xf32>, vector<12x128xf32>, vector<16x128xf32> -> vector<16x128xf32>
    %24 = vector.extract_strided_slice %23 {offsets = [0, 0], sizes = [8, 128], strides = [1, 1]} : vector<16x128xf32> to vector<8x128xf32>
    %25 = vector.extract_strided_slice %23 {offsets = [8, 0], sizes = [8, 128], strides = [1, 1]} : vector<16x128xf32> to vector<8x128xf32>
    %cst_9 = arith.constant 0.000000e+00 : f32
    %26 = vector.broadcast %cst_9 : f32 to vector<8x128xf32>
    %27 = arith.maximumf %24, %26 : vector<8x128xf32>
    %28 = vector.extract_strided_slice %27 {offsets = [0, 127], sizes = [8, 1], strides = [1, 1]} : vector<8x128xf32> to vector<8x1xf32>
    %29 = vector.extract_strided_slice %27 {offsets = [0, 0], sizes = [8, 127], strides = [1, 1]} : vector<8x128xf32> to vector<8x127xf32>
    %30 = tpu.concatenate %28, %29 in 1 : vector<8x1xf32>, vector<8x127xf32> -> vector<8x128xf32>
    %cst_10 = arith.constant 0.000000e+00 : f32
    %31 = vector.broadcast %cst_10 : f32 to vector<8x128xf32>
    %32 = vector.shape_cast %2 : vector<1x128xi1> to vector<1x128xi1>
    %33 = vector.broadcast %32 : vector<1x128xi1> to vector<8x128xi1>
    %34 = arith.select %33, %30, %31 : vector<8x128xi1>, vector<8x128xf32>
    %35 = vector.extract_strided_slice %27 {offsets = [0, 1], sizes = [8, 127], strides = [1, 1]} : vector<8x128xf32> to vector<8x127xf32>
    %36 = vector.extract_strided_slice %27 {offsets = [0, 0], sizes = [8, 1], strides = [1, 1]} : vector<8x128xf32> to vector<8x1xf32>
    %37 = tpu.concatenate %35, %36 in 1 : vector<8x127xf32>, vector<8x1xf32> -> vector<8x128xf32>
    %cst_11 = arith.constant 0.000000e+00 : f32
    %38 = vector.broadcast %cst_11 : f32 to vector<8x128xf32>
    %39 = vector.shape_cast %4 : vector<1x128xi1> to vector<1x128xi1>
    %40 = vector.broadcast %39 : vector<1x128xi1> to vector<8x128xi1>
    %41 = arith.select %40, %37, %38 : vector<8x128xi1>, vector<8x128xf32>
    %42 = tpu.concatenate %34, %27, %41 in 0 : vector<8x128xf32>, vector<8x128xf32>, vector<8x128xf32> -> vector<24x128xf32>
    %cst_12 = arith.constant dense<0.000000e+00> : vector<8x128xf32>
    %43 = tpu.matmul %7, %42, %cst_12 {dimension_numbers = #tpu.dot_dimension_numbers<[1], [0], [0], [1], [0, 0, 1, 1], [], []>} : vector<8x24xf32>, vector<24x128xf32>, vector<8x128xf32> -> vector<8x128xf32>
    %44 = arith.addf %43, %25 : vector<8x128xf32>
    %cst_13 = arith.constant 0.000000e+00 : f32
    %45 = vector.broadcast %cst_13 : f32 to vector<8x128xf32>
    %46 = arith.maximumf %44, %45 : vector<8x128xf32>
    %c0_14 = arith.constant 0 : index
    %c0_15 = arith.constant 0 : index
    %47 = vector.load %arg5[%c0_14, %c0_15] : memref<8x128xf32, #tpu.memory_space<vmem>>, vector<8x128xf32>
    tpu.vector_store %arg5[%c0_14, %c0_15], %46 {strides = array<i32>} : memref<8x128xf32, #tpu.memory_space<vmem>>, vector<8x128xf32>,
    return
  }
  func.func @transform_0(%arg0: i32) -> (i32, i32) {
    %c0_i32 = arith.constant 0 : i32
    %c0_i32_0 = arith.constant 0 : i32
    %c0_i32_1 = arith.constant 0 : i32
    return %c0_i32, %c0_i32_0 : i32, i32
  }
  func.func @transform_1(%arg0: i32) -> (i32, i32) {
    %c0_i32 = arith.constant 0 : i32
    %c0_i32_0 = arith.constant 0 : i32
    return %c0_i32, %arg0 : i32, i32
  }
  func.func @transform_2(%arg0: i32) -> (i32, i32) {
    %c0_i32 = arith.constant 0 : i32
    %c0_i32_0 = arith.constant 0 : i32
    %c0_i32_1 = arith.constant 0 : i32
    return %c0_i32, %c0_i32_0 : i32, i32
  }
  func.func @transform_3(%arg0: i32) -> (i32, i32) {
    %c0_i32 = arith.constant 0 : i32
    %c0_i32_0 = arith.constant 0 : i32
    %c0_i32_1 = arith.constant 0 : i32
    return %c0_i32, %c0_i32_0 : i32, i32
  }
  func.func @transform_4(%arg0: i32) -> (i32, i32) {
    %c0_i32 = arith.constant 0 : i32
    %c0_i32_0 = arith.constant 0 : i32
    return %c0_i32, %arg0 : i32, i32
  }
}

</mosaic_0001>

<bundles_post_ra>
// kernel: tpu_custom_call.1
= control target key start
LH: loop header
LB: loop body
LE: loop exit
PB: predicated region body
PF: predicated region fallthrough
CT: control target
= control target key end

     0   :  { %6 = vsyncpa [#allocation3], 0  ;;  %s128_s0 = inlined_call_operand.hbm [shape: s32[8,128], index: 0, kind: input, shape index: {}]   ;;  %s129_s1 = inlined_call_operand.hbm [shape: s32[8,128], index: 1, kind: output, shape index: {}]  }
   0x1   :  { %7 = vsyncpa [#allocation4], 0  ;;  %s91_s6 = smov [#allocation2]   ;;  %s43_s10 = scalar_lea.hbm %s128_s0, 128 }
   0x2   :  { %s14_s7 = sshll.u32 %s91_s6, 4  ;;  %p44_p0 = scmp.ne.s32.totalorder %s128_s0, %s43_s10  ;;  %s15_s7 = int_to_ptr.vmem [resolvable:$true] %s14_s7 }
   0x3   :  { %p47_p1 = scmp.lt.u32.totalorder %s43_s10, %s128_s0 }
   0x5   :  { %p49_p2 = pnand %p47_p1, %p44_p0 }
   0x7   :  { %52 = shalt.err (!%p49_p2)
}
   0x8   :  { %s53_s15 = scalar_lea.vmem %s15_s7, 128  ;;  %p58_p4 = scmp.lt.s32.totalorder %s15_s7, %s15_s7 }
   0x9   :  { %p54_p3 = scmp.ne.s32.totalorder %s15_s7, %s53_s15  ;;  %p59_p5 = scmp.lt.s32.totalorder %s53_s15, %s53_s15 }
   0xb   :  { %p60_p6 = por %p59_p5, %p58_p4 }
   0xd   :  { %p61_p7 = pnand %p60_p6, %p54_p3 }
   0xf   :  { %64 = shalt.err (!%p61_p7)
}
  0x10   :  { %17 = dma.hbm_to_vmem [thread:$0]  %s128_s0, 128, %s15_s7, [#allocation3]  }
  0x11   :  { %87 = dma.done.wait [#allocation3], 128  }
  0x12   :  { %88 = vsyncadd [#allocation3], 4294967168  ;;  %v21_v0 = vld [vmem:[#allocation2] sm:$0xff]  ;;  %s92_s18 = smov 1   ;;  %s93_s19 = smov [#allocation5]  }
  0x13   :  { %22 = vrot.lane.b32.xlu0 %v21_v0, %s92_s18  ;;  %s31_s20 = sshll.u32 %s93_s19, 4  ;;  %s32_s20 = int_to_ptr.vmem [resolvable:$true] %s31_s20 }
  0x14   :  { %s65_s21 = scalar_lea.vmem %s32_s20, 128  ;;  %p70_p9 = scmp.lt.s32.totalorder %s32_s20, %s32_s20 }
  0x15   :  { %p66_p8 = scmp.ne.s32.totalorder %s32_s20, %s65_s21  ;;  %p71_p10 = scmp.lt.s32.totalorder %s65_s21, %s65_s21 }
  0x17   :  { %p72_p11 = por %p71_p10, %p70_p9 }
  0x19   :  { %p73_p12 = pnand %p72_p11, %p66_p8 }
  0x85   :  { %v23_v1 = vpop.permute.xlu0 %22 }
  0x86   :  { %24 = vst [vmem:[#allocation5] sm:$0xff] %v23_v1 }
  0x87   :  { %76 = shalt.err (!%p73_p12)
}
  0x88   :  { %s77_s0 = scalar_lea.hbm %s129_s1, 128 }
  0x89   :  { %p78_p13 = scmp.ne.s32.totalorder %s129_s1, %s77_s0  ;;  %p81_p0 = scmp.lt.u32.totalorder %s77_s0, %s129_s1 }
  0x8b   :  { %p83_p1 = pnand %p81_p0, %p78_p13 }
  0x8d   :  { %86 = shalt.err (!%p83_p1)
}
  0x8e   :  { %34 = dma.vmem_to_hbm [thread:$0]  %s32_s20, 128, %s129_s1, [#allocation4]  }
  0x8f   :  { %89 = dma.done.wait [#allocation4], 128  }
  0x90   :  { %90 = vsyncadd [#allocation4], 4294967168 }
  0x91   :  { %38 = vsyncpa [#allocation3], 1 }
  0x92   :  { %39 = vsyncpa [#allocation4], 1 }

// kernel: tpu_custom_call.1
= control target key start
LH: loop header
LB: loop body
LE: loop exit
PB: predicated region body
PF: predicated region fallthrough
CT: control target
= control target key end

     0   :  { %9 = vsyncpa [#allocation3], 0  ;;  %s522_s0 = inlined_call_operand.hbm [shape: s32[1,128], index: 0, kind: input, shape index: {}]   ;;  %s523_s1 = inlined_call_operand.hbm [shape: f32[4,128], index: 1, kind: input, shape index: {}]   ;;  %s524_s2 = inlined_call_operand.hbm [shape: f32[16,12], index: 2, kind: input, shape index: {}]   ;;  %s525_s3 = inlined_call_operand.vmem [shape: f32[8,24], index: 3, kind: input, shape index: {}]   ;;  %s526_s4 = inlined_call_operand.hbm [shape: f32[8,128], index: 4, kind: output, shape index: {}]  }
   0x1   :  { %10 = vsyncpa [#allocation6], 0 }
   0x2   :  { %11 = vsyncpa [#allocation4], 0  ;;  %s421_s15 = smov [#allocation5]   ;;  %s422_s17 = smov [#allocation2]  }
   0x3   :  { %s28_s16 = sshll.u32 %s421_s15, 4  ;;  %s18_s18 = sshll.u32 %s422_s17, 4  ;;  %s29_s16 = int_to_ptr.vmem [resolvable:$true] %s28_s16  ;;  %s19_s18 = int_to_ptr.vmem [resolvable:$true] %s18_s18 }
   0x4   :  { %s327_s21 = scalar_lea.hbm %s523_s1, 64 }
   0x5   :  { %p328_p0 = scmp.ne.s32.totalorder %s523_s1, %s327_s21  ;;  %p331_p1 = scmp.lt.u32.totalorder %s327_s21, %s523_s1 }
   0x7   :  { %p333_p2 = pnand %p331_p1, %p328_p0 }
   0x9   :  { %336 = shalt.err (!%p333_p2)
}
   0xa   :  { %s337_s26 = scalar_lea.vmem %s29_s16, 64  ;;  %p342_p4 = scmp.lt.s32.totalorder %s29_s16, %s29_s16 }
   0xb   :  { %p338_p3 = scmp.ne.s32.totalorder %s29_s16, %s337_s26  ;;  %p343_p5 = scmp.lt.s32.totalorder %s337_s26, %s337_s26 }
   0xd   :  { %p344_p6 = por %p343_p5, %p342_p4 }
   0xf   :  { %p345_p7 = pnand %p344_p6, %p338_p3 }
  0x11   :  { %348 = shalt.err (!%p345_p7)
}
  0x12   :  { %31 = dma.hbm_to_vmem [thread:$0]  %s523_s1, 64, %s29_s16, [#allocation6]  }
  0x13   :  { %s349_s5 = scalar_lea.hbm %s522_s0, 16 }
  0x14   :  { %p350_p8 = scmp.ne.s32.totalorder %s522_s0, %s349_s5  ;;  %p353_p9 = scmp.lt.u32.totalorder %s349_s5, %s522_s0 }
  0x16   :  { %p355_p10 = pnand %p353_p9, %p350_p8 }
  0x18   :  { %358 = shalt.err (!%p355_p10)
}
  0x19   :  { %s359_s10 = scalar_lea.vmem %s19_s18, 16  ;;  %s363_s11 = scalar_lea.vmem %s19_s18, 32 }
  0x1a   :  { %p360_p11 = scmp.ne.s32.totalorder %s19_s18, %s359_s10  ;;  %p364_p12 = scmp.lt.s32.totalorder %s19_s18, %s19_s18 }
  0x1b   :  { %p365_p13 = scmp.lt.s32.totalorder %s363_s11, %s359_s10 }
  0x1d   :  { %p366_p0 = por %p365_p13, %p364_p12 }
  0x1f   :  { %p367_p1 = pnand %p366_p0, %p360_p11 }
  0x21   :  { %370 = shalt.err (!%p367_p1)
}
  0x22   :  { %21 = dma.hbm_to_vmem [thread:$0]  %s522_s0, 16, %s19_s18, [#allocation3]  }
  0x23   :  { %s423_s13 = smov [#allocation7]   ;;  %s371_s17 = scalar_lea.hbm %s524_s2, 256 }
  0x24   :  { %s37_s14 = sshll.u32 %s423_s13, 4  ;;  %p372_p2 = scmp.ne.s32.totalorder %s524_s2, %s371_s17  ;;  %s38_s14 = int_to_ptr.vmem [resolvable:$true] %s37_s14 }
  0x25   :  { %p375_p3 = scmp.lt.u32.totalorder %s371_s17, %s524_s2 }
  0x27   :  { %p377_p4 = pnand %p375_p3, %p372_p2 }
  0x29   :  { %380 = shalt.err (!%p377_p4)
}
  0x2a   :  { %s381_s23 = scalar_lea.vmem %s38_s14, 256  ;;  %p386_p6 = scmp.lt.s32.totalorder %s38_s14, %s38_s14 }
  0x2b   :  { %p382_p5 = scmp.ne.s32.totalorder %s38_s14, %s381_s23  ;;  %p387_p7 = scmp.lt.s32.totalorder %s381_s23, %s381_s23 }
  0x2d   :  { %p388_p8 = por %p387_p7, %p386_p6 }
  0x2f   :  { %p389_p9 = pnand %p388_p8, %p382_p5 }
  0x31   :  { %392 = shalt.err (!%p389_p9)
}
  0x32   :  { %s424_s0 = smov 128   ;;  %s425_s18 = smov 8  }
  0x33   :  { %43 = dma.hbm_to_vmem [thread:$0]  %s524_s2, 256, %s38_s14, [#allocation6], %s424_s0, %s424_s0, %s425_s18  }
  0x34   :  { %415 = dma.done.wait [#allocation3], 16  }
  0x35   :  { %416 = vsyncadd [#allocation3], 4294967280 }
  0x36   :  { %417 = dma.done.wait [#allocation6], 320  }
  0x37   :  { %418 = vsyncadd [#allocation6], 4294966976  ;;  %vm87_vm0 = vcmask 97280   ;;  %v58_v0 = vld [vmem:[#allocation5] sm:$0xf]  ;;  %v59_v1 = vld [vmem:[#allocation7] sm:$0xff]  ;;  %v67_v2 = vlaneseq }
  0x38   :  { %s426_s26 = smov 1   ;;  %292 = vmatprep.mubr.msk.f32.mxu0 %vm87_vm0, %v59_v1  ;;  %s427_s27 = smov 127   ;;  %v55_v3 = vld [vmem:[#allocation2] sm:$0x1]  ;;  %v428_v6 = vmov 0   ;;  %v83_v12 = vrot.slane %v58_v0, 4 }
  0x39   :  { %63 = vrot.lane.b32.xlu0 %v58_v0, %s426_s26  ;;  %v68_v4 = vshrl.u32 %v67_v2, 7  ;;  %vm56_vm1 = vcmp.ge.s32.totalorder %v55_v3, 1  ;;  %vm57_vm2 = vcmp.lt.s32.totalorder %v55_v3, 15  ;;  %vm85_vm5 = vcmask 1043456   ;;  %v60_v18 = vld [vmem:[#allocation7 + $0x8] sm:$0xff]  ;;  %v61_v26 = vld [vmem:[%s525_s3] sm:$0xff] }
  0x3a   :  { %v66_v7 = vsel %vm56_vm1, 1, %v428_v6  ;;  %v76_v9 = vsel %vm57_vm2, 1, %v428_v6  ;;  %vm429_vm6 = vmmov 1   ;;  %v430_v19 = vmov 0.0|0.0   ;;  %s433_s29 = smov [#allocation8]  }
  0x3b   :  { %v69_v5 = vsub.s32 0, %v68_v4  ;;  %vm305_vm7 = vmpackc.low %vm85_vm5, %vm429_vm6  ;;  %310 = vmatprep.subr.bf16.mxu1 %v430_v19  ;;  %vm431_vm8 = vmmov 0   ;;  %v432_v20 = vmov 0.0   ;;  %vm182_vm10 = vcmask 195584   ;;  %s264_s30 = sshll.u32 %s433_s29, 4  ;;  %s265_s30 = int_to_ptr.vmem [resolvable:$true] %s264_s30 }
  0x3c   :  { %301 = vmatprep.mubr.msk.f32.mxu1 %vm431_vm8, %v432_v20  ;;  %s393_s5 = scalar_lea.vmem %s265_s30, 128  ;;  %p398_p11 = scmp.lt.s32.totalorder %s265_s30, %s265_s30 }
  0x3d   :  { %73 = vrot.lane.b32.xlu0 %v58_v0, %s427_s27  ;;  %v70_v8 = vrot.slane %v66_v7, %v69_v5  ;;  %v80_v10 = vrot.slane %v76_v9, %v69_v5  ;;  %p394_p10 = scmp.ne.s32.totalorder %s265_s30, %s393_s5  ;;  %p399_p12 = scmp.lt.s32.totalorder %s393_s5, %s393_s5 }
  0x3f   :  { %vm71_vm3 = vcmp.eq.s32.totalorder %v70_v8, 1  ;;  %vm81_vm4 = vcmp.eq.s32.totalorder %v80_v10, 1  ;;  %p400_p13 = por %p399_p12, %p398_p11 }
  0x40   :  { %vm312_vm9 = vmpackc.low %vm429_vm6, %vm71_vm3 }
  0x41   :  { %p401_p0 = pnand %p400_p13, %p394_p10 }
  0xab   :  { %v64_v11 = vpop.permute.xlu0 %63 }
  0xac   :  { %v72_v13 = vsel %vm71_vm3, %v64_v11, 0.0 }
  0xad   :  { %v86_v16 = vsel %vm85_vm5, %v72_v13, %v83_v12 }
  0xaf   :  { %v74_v14 = vpop.permute.xlu0 %73 }
  0xb0   :  { %v82_v15 = vsel %vm81_vm4, %v74_v14, 0.0 }
  0xb1   :  { %v304_v17 = vpack.c.bf16 %v82_v15, %v86_v16 }
  0xb3   :  { %306 = vmatprep.subr.msk.bf16.mxu0 %vm305_vm7, %v304_v17 }
  0xb4   :  { %309 = vmatpush3.bf16.msk.msra.mxu0 %vm305_vm7, %v304_v17 }
  0xb7   :  { %293 = vmatmul.mubr.msk.f32.vlgmr.msra.gmra.mrb[0].mxu0 %vm87_vm0, %v60_v18 }
 0x18a   :  { %v294_v21 = vpop.f32.mrb[0].mxu0 }
 0x18b   :  { %v163_v22 = vpop.f32.mrb[1].mxu0 }
 0x18c   :  { %v172_v23 = vmax.f32 %v163_v22, 0.0 }
 0x18e   :  { %174 = vrot.lane.b32.xlu1 %v172_v23, %s426_s26 }
 0x192   :  { %178 = vrot.lane.b32.xlu1 %v172_v23, %s427_s27 }
 0x200   :  { %v175_v24 = vpop.permute.xlu1 %174 }
 0x201   :  { %v311_v25 = vpack.c.bf16 %v172_v23, %v175_v24 }
 0x203   :  { %313 = vmatpush3.bf16.msk.msra.mxu1 %vm312_vm9, %v311_v25 }
 0x204   :  { %299 = vmatprep.subr.mxu1 %v432_v20  ;;  %v179_v27 = vpop.permute.xlu1 %178 }
 0x207   :  { %300 = vmatpush3.msk.msra.mxu1 %vm81_vm4, %v179_v27 }
 0x208   :  { %302 = vmatmul.mubr.msk.f32.vlgmr.msra.gmra.mrb[0].mxu1 %vm182_vm10, %v61_v26 }
 0x2db   :  { %v252_v28 = vpop.f32.mrb[0].mxu1 }
 0x2dc   :  { %v253_v29 = vadd.f32 %v294_v21, %v252_v28  ;;  %v303_v30 = vpop.f32.mrb[1].mxu1 }
 0x2de   :  { %v256_v31 = vmax.f32 %v253_v29, 0.0 }
 0x2e0   :  { %257 = vst [vmem:[#allocation8] sm:$0xff] %v256_v31 }
 0x2e1   :  { %404 = shalt.err (!%p401_p0)
}
 0x2e2   :  { %s405_s7 = scalar_lea.hbm %s526_s4, 128 }
 0x2e3   :  { %p406_p1 = scmp.ne.s32.totalorder %s526_s4, %s405_s7  ;;  %p409_p2 = scmp.lt.u32.totalorder %s405_s7, %s526_s4 }
 0x2e5   :  { %p411_p3 = pnand %p409_p2, %p406_p1 }
 0x2e7   :  { %414 = shalt.err (!%p411_p3)
}
 0x2e8   :  { %267 = dma.vmem_to_hbm [thread:$0]  %s265_s30, 128, %s526_s4, [#allocation4]  }
 0x2e9   :  { %419 = dma.done.wait [#allocation4], 128  }
 0x2ea   :  { %420 = vsyncadd [#allocation4], 4294967168 }
 0x2eb   :  { %271 = vsyncpa [#allocation3], 1 }
 0x2ec   :  { %272 = vsyncpa [#allocation6], 1 }
 0x2ed   :  { %273 = vsyncpa [#allocation4], 1 }

</bundles_post_ra>
